<compile_context>
chip_gen: v5e
topology: v5e:2x2
jax: 0.10.0
libtpu: 0.0.40
codegen_flags: <defaults>
</compile_context>

<pallas_src>
import functools

import numpy as np
import jax
import jax.numpy as jnp
from jax.experimental import pallas as pl
from jax.experimental.pallas import tpu as pltpu


# ----------------------------------------------------------------------------
# Helpers
# ----------------------------------------------------------------------------
def _round_up(x, m):
    return (x + m - 1) // m * m


def _zero_index_map(ndim):
    return lambda i: (0,) * ndim


# ----------------------------------------------------------------------------
# Fused Pallas kernel: runs ALL couplings on one (TM, C) row tile kept in VMEM.
# Ref layout (inputs):
#   x_ref (TM, C),
#   w_in (half, n_coup*H), b_in (1, n_coup*H),
#   [w_hid (depth-1, n_coup*H, n_coup*H), b_hid (depth-1, 1, n_coup*H)]  (depth>1),
#   w_out (n_coup*H, n_coup*C)  (columns = [all log_s | all t]), b_out (1, n_coup*C)
# Outputs:
#   y_ref (TM, C), ld_ref (TM, 1) per-row sum(log s) over all couplings.
# ----------------------------------------------------------------------------
def make_fused_kernel(n_coup, depth, half, matmul_dtype, approx_recip):
    has_hidden = depth > 1
    nh = n_coup * half

    def kernel(*refs):
        x_ref = refs[0]
        if has_hidden:
            (w_in_ref, b_in_ref, w_hid_ref, b_hid_ref,
             w_out_ref, b_out_ref) = refs[1:7]
            y_ref, ld_ref = refs[7], refs[8]
        else:
            w_in_ref, b_in_ref, w_out_ref, b_out_ref = refs[1:5]
            w_hid_ref = b_hid_ref = None
            y_ref, ld_ref = refs[5], refs[6]

        x = x_ref[...].astype(jnp.float32)        # (TM, C)
        xa = x[:, :half]                          # pass-through half (invariant)
        xb = x[:, half:]                          # transformed half

        # --- All conditioning MLPs depend only on xa -> hoisted out of the
        # --- serial chain; lane-dense matmuls, f32 accumulation on the MXU.
        h = jnp.dot(xa.astype(matmul_dtype), w_in_ref[...],
                    preferred_element_type=jnp.float32)
        h = jnp.maximum(h + b_in_ref[...], 0.0)                    # (TM, n_coup*H)
        for li in range(depth - 1):
            h = jnp.dot(h.astype(matmul_dtype), w_hid_ref[li],
                        preferred_element_type=jnp.float32)
            h = jnp.maximum(h + b_hid_ref[li], 0.0)
        st = jnp.dot(h.astype(matmul_dtype), w_out_ref[...],
                     preferred_element_type=jnp.float32)
        st = st + b_out_ref[...]                   # (TM, n_coup*C) = [all z | all t]

        # --- Vectorised epilogue: stable log-sigmoid, s via shared exp + recip.
        z = st[:, :nh] + 2.0
        t_all = st[:, nh:]
        e = jnp.exp(-jnp.abs(z))
        log_s = jnp.minimum(z, 0.0) - jnp.log1p(e)          # log(sigmoid(z))
        if approx_recip:
            r = pl.reciprocal(1.0 + e, approx=True)
        else:
            r = 1.0 / (1.0 + e)
        s_all = jnp.where(z >= 0.0, r, e * r)               # == sigmoid(z)

        # Per-row logdet over all couplings at once (padded rows are sliced off
        # by the wrapper before the batch reduction).
        ld_ref[...] = jnp.sum(log_s, axis=-1, keepdims=True)

        # Serial, cheap VPU-only recurrence over couplings.
        for ci in range(n_coup):
            sl = slice(ci * half, (ci + 1) * half)
            xb = (xb + t_all[:, sl]) * s_all[:, sl]

        # Single full-width lane-dense store of the result tile.
        y_ref[...] = jnp.concatenate([xa, xb], axis=-1).astype(y_ref.dtype)

    return kernel


# ----------------------------------------------------------------------------
# Weight packing: concat first layers, block-diagonalise hidden/output layers,
# permute output columns to [all log_s | all t].
# ----------------------------------------------------------------------------
def _pack_weights(coup_list, matmul_dtype):
    n_coup = len(coup_list)
    depth = len(coup_list[0]) - 1                 # number of ReLU'd layers
    half = coup_list[0][0][0].shape[0]
    hid = coup_list[0][-1][0].shape[0]
    c = coup_list[0][-1][0].shape[1]

    # First layers: concat along the output dim -> one (half, n_coup*H) matmul.
    w_in = jnp.concatenate([cp[0][0] for cp in coup_list], axis=1).astype(matmul_dtype)
    b_in = jnp.concatenate([cp[0][1] for cp in coup_list]).reshape(1, -1)
    weights = [w_in, b_in]

    # Hidden layers: block-diagonal over couplings (stays in (TM, n_coup*H)).
    if depth > 1:
        w_hid, b_hid = [], []
        for li in range(depth - 1):
            w = jnp.zeros((n_coup * hid, n_coup * hid), matmul_dtype)
            for ci, cp in enumerate(coup_list):
                w = w.at[ci * hid:(ci + 1) * hid, ci * hid:(ci + 1) * hid].set(
                    cp[1 + li][0].astype(matmul_dtype))
            w_hid.append(w)
            b_hid.append(jnp.concatenate(
                [cp[1 + li][1] for cp in coup_list]).reshape(1, -1))
        weights += [jnp.stack(w_hid), jnp.stack(b_hid)]

    # Output layers: block-diagonal, columns permuted to [all log_s | all t].
    w_out = jnp.zeros((n_coup * hid, n_coup * c), matmul_dtype)
    b_out = jnp.zeros((n_coup * c,), jnp.float32)
    for ci, cp in enumerate(coup_list):
        wo, bo = cp[-1]
        rows = slice(ci * hid, (ci + 1) * hid)
        zc = slice(ci * half, (ci + 1) * half)
        tc = slice(n_coup * half + ci * half, n_coup * half + (ci + 1) * half)
        w_out = w_out.at[rows, zc].set(wo[:, :half].astype(matmul_dtype))
        w_out = w_out.at[rows, tc].set(wo[:, half:].astype(matmul_dtype))
        b_out = b_out.at[zc].set(bo[:half])
        b_out = b_out.at[tc].set(bo[half:])
    weights += [w_out, b_out.reshape(1, -1)]
    return weights, depth, half


# ----------------------------------------------------------------------------
# Forward (non-reverse) pass of EfficientVRNVP.
# ----------------------------------------------------------------------------
@functools.partial(jax.jit, static_argnames=("tile_rows", "matmul_dtype", "io_dtype"))
def efficient_vrnvp_forward(x, all_params, *, tile_rows=2048,
                            matmul_dtype=jnp.bfloat16, io_dtype=jnp.bfloat16):
    """x: (B, T, C) -> (y: (B, T, C), logdet: (B,))."""
    b, t, c = x.shape
    n_rows = b * t

    # Flatten (n_flow, n_modules) into one fused coupling chain
    # (Flow / EfficientVRNVP just compose couplings and sum their logdets).
    coup_list = [cp for flow_params in all_params for cp in flow_params]
    n_coup = len(coup_list)
    weights, depth, half = _pack_weights(coup_list, matmul_dtype)
    approx_recip = matmul_dtype != jnp.float32

    x2d = x.reshape(n_rows, c).astype(io_dtype)

    # Row tiling: large tiles (multiple of 16 for bf16 sublane packing), pad the
    # remainder and mask it off after the call instead of asserting divisibility.
    tm = _round_up(min(tile_rows, _round_up(n_rows, 16)), 16)
    n_pad = _round_up(n_rows, tm)
    if n_pad != n_rows:
        x2d = jnp.pad(x2d, ((0, n_pad - n_rows), (0, 0)))
    grid = (n_pad // tm,)
    # TODO(synk): on v7x prefer an even number of row tiles so both TensorCores
    #             get work; controllable via tile_rows for now.

    # VMEM budget: double-buffered activation tiles + resident weights + the
    # f32 (TM, n_coup*H)/(TM, n_coup*C) intermediates the kernel materialises.
    io_bytes = np.dtype(io_dtype).itemsize
    nh_hid = weights[0].shape[1]                  # n_coup * H
    nst = 2 * n_coup * half                       # n_coup * C
    tile_bytes = tm * c * io_bytes
    weight_bytes = sum(int(w.size) * w.dtype.itemsize for w in weights)
    interm_bytes = tm * 4 * (c + 2 * nh_hid + 4 * nst)
    est = 2 * (2 * tile_bytes + tm * 4) + 2 * weight_bytes + interm_bytes + (4 << 20)
    vmem_limit = int(min(64 * 2**20, max(32 * 2**20, est)))

    in_specs = [pl.BlockSpec((tm, c), lambda i: (i, 0))]
    in_specs += [pl.BlockSpec(w.shape, _zero_index_map(w.ndim)) for w in weights]

    y_pad, ld_pad = pl.pallas_call(
        make_fused_kernel(n_coup, depth, half, matmul_dtype, approx_recip),
        grid=grid,
        in_specs=in_specs,
        out_specs=[
            pl.BlockSpec((tm, c), lambda i: (i, 0)),
            pl.BlockSpec((tm, 1), lambda i: (i, 0)),
        ],
        out_shape=[
            jax.ShapeDtypeStruct((n_pad, c), io_dtype),
            jax.ShapeDtypeStruct((n_pad, 1), jnp.float32),
        ],
        compiler_params=pltpu.CompilerParams(
            dimension_semantics=("parallel",),   # lets v7x shard row tiles over 2 TCs
            vmem_limit_bytes=vmem_limit,
        ),
    )(x2d, *weights)

    y = y_pad[:n_rows].astype(x.dtype).reshape(b, t, c)
    logdet = ld_pad[:n_rows, 0].reshape(b, t).sum(axis=1)   # padded rows excluded
    return y, logdet


# ----------------------------------------------------------------------------
# Parameter construction (deterministic, synthetic).
# ----------------------------------------------------------------------------
def init_coupling_params(key, in_channels, hidden_dim, depth):
    half = in_channels // 2
    dims = [half] + [hidden_dim] * depth + [in_channels]
    params = []
    for li in range(len(dims) - 1):
        key, kw, kb = jax.random.split(key, 3)
        fan_in = dims[li]
        w = jax.random.normal(kw, (dims[li], dims[li + 1]), jnp.float32) * (
            0.1 / jnp.sqrt(fan_in))
        b = jax.random.normal(kb, (dims[li + 1],), jnp.float32) * 0.01
        params.append((w, b))
    return params


def init_vrnvp_params(key, n_flow, n_modules, in_channels, hidden_dim, depth):
    all_params = []
    for fi in range(n_flow):
        flow_params = []
        for mj in range(n_modules):
            sub = jax.random.fold_in(jax.random.fold_in(key, fi), mj)
            flow_params.append(
                init_coupling_params(sub, in_channels, hidden_dim, depth))
        all_params.append(flow_params)
    return all_params


# ----------------------------------------------------------------------------
# Pure-JAX float32 reference (same coupling instantiation).
# ----------------------------------------------------------------------------
def reference_forward(x, all_params):
    b, t, c = x.shape
    half = c // 2
    x2d = x.reshape(b * t, c).astype(jnp.float32)
    logdet = jnp.zeros((b,), jnp.float32)
    for flow_params in all_params:
        for params in flow_params:
            xa, xb = x2d[:, :half], x2d[:, half:]
            h = xa
            for li, (w, bias) in enumerate(params):
                h = h @ w + bias
                if li < len(params) - 1:
                    h = jnp.maximum(h, 0.0)
            log_s, tt = h[:, :half], h[:, half:]
            s = jax.nn.sigmoid(log_s + 2.0)
            x2d = jnp.concatenate([xa, (xb + tt) * s], axis=-1)
            logdet = logdet + jnp.log(s).sum(-1).reshape(b, t).sum(1)
    return x2d.reshape(b, t, c), logdet


if __name__ == "__main__":
    # Small shapes implied by the module: (batch, seq, in_channels).
    B, T, C = 2, 8, 32          # in_channels must be even
    HIDDEN_DIM = 32
    HIDDEN_DEPTH = 2            # number of hidden (ReLU) layers in the MLP
    N_FLOW = 2
    N_MODULES = 1               # len(module_list)

    key = jax.random.PRNGKey(0)
    kx, kp = jax.random.split(key)
    x = jax.random.normal(kx, (B, T, C), jnp.float32)
    params = init_vrnvp_params(kp, N_FLOW, N_MODULES, C, HIDDEN_DIM, HIDDEN_DEPTH)
    y_ref, ld_ref = reference_forward(x, params)

    # 1) Exact-semantics check: f32 matmuls + f32 I/O vs pure-JAX reference.
    y32, ld32 = efficient_vrnvp_forward(x, params, matmul_dtype=jnp.float32,
                                        io_dtype=jnp.float32)
    jax.block_until_ready((y32, ld32))
    assert jnp.allclose(y32, y_ref, atol=1e-4, rtol=1e-5)
    assert jnp.allclose(ld32, ld_ref, atol=1e-2, rtol=1e-4)

    # 2) Default fast path: bf16 I/O, bf16 MXU inputs, f32 accumulation.
    y_bf, ld_bf = efficient_vrnvp_forward(x, params)
    jax.block_until_ready((y_bf, ld_bf))
    assert jnp.allclose(y_bf, y_ref, atol=3e-2, rtol=3e-2)
    assert jnp.allclose(ld_bf, ld_ref, atol=1.0, rtol=2e-2)

    # 3) Padding / multi-tile grid path (n_rows not a multiple of tile_rows).
    B2, T2 = 3, 171
    kx2, kp2 = jax.random.split(jax.random.fold_in(key, 7))
    x2 = jax.random.normal(kx2, (B2, T2, C), jnp.float32)
    params2 = init_vrnvp_params(kp2, 3, 2, C, HIDDEN_DIM, HIDDEN_DEPTH)
    y2, ld2 = efficient_vrnvp_forward(x2, params2, tile_rows=256)
    jax.block_until_ready((y2, ld2))
    y2_ref, ld2_ref = reference_forward(x2, params2)
    assert jnp.allclose(y2, y2_ref, atol=5e-2, rtol=5e-2)
    assert jnp.allclose(ld2, ld2_ref, atol=2.0, rtol=1e-2)

    print("KERNEL_OK")
</pallas_src>

<mosaic_0001>
module attributes {stable_mosaic.version = 11 : i64} {
  func.func @kernel(%arg0: i32, %arg1: memref<16x32xf32, #tpu.memory_space<vmem>>, %arg2: memref<16x64xf32, #tpu.memory_space<vmem>>, %arg3: memref<1x64xf32, #tpu.memory_space<vmem>>, %arg4: memref<1x64x64xf32, #tpu.memory_space<vmem>>, %arg5: memref<1x1x64xf32, #tpu.memory_space<vmem>>, %arg6: memref<64x64xf32, #tpu.memory_space<vmem>>, %arg7: memref<1x64xf32, #tpu.memory_space<vmem>>, %arg8: memref<16x32xf32, #tpu.memory_space<vmem>>, %arg9: memref<16x1xf32, #tpu.memory_space<vmem>>) attributes {dimension_semantics = [#tpu.dimension_semantics<parallel>], iteration_bounds = array<i64: 1>, scalar_prefetch = 0 : i64, scratch_operands = 0 : i64, tpu.core_type = #tpu.core_type<tc>, window_params = [{transform_indices = @transform_0, window_bounds = array<i64: 16, 32>}, {pipeline_mode = #tpu.pipeline_mode<synchronous>, transform_indices = @transform_1, window_bounds = array<i64: 16, 64>}, {pipeline_mode = #tpu.pipeline_mode<synchronous>, transform_indices = @transform_2, window_bounds = array<i64: 1, 64>}, {pipeline_mode = #tpu.pipeline_mode<synchronous>, transform_indices = @transform_3, window_bounds = array<i64: 1, 64, 64>}, {pipeline_mode = #tpu.pipeline_mode<synchronous>, transform_indices = @transform_4, window_bounds = array<i64: 1, 1, 64>}, {pipeline_mode = #tpu.pipeline_mode<synchronous>, transform_indices = @transform_5, window_bounds = array<i64: 64, 64>}, {pipeline_mode = #tpu.pipeline_mode<synchronous>, transform_indices = @transform_6, window_bounds = array<i64: 1, 64>}, {transform_indices = @transform_7, window_bounds = array<i64: 16, 32>}, {transform_indices = @transform_8, window_bounds = array<i64: 16, 1>}]} {
    %c0 = arith.constant 0 : index
    %c0_0 = arith.constant 0 : index
    %0 = vector.load %arg1[%c0, %c0_0] : memref<16x32xf32, #tpu.memory_space<vmem>>, vector<16x32xf32>
    %1 = vector.extract_strided_slice %0 {offsets = [0, 0], sizes = [16, 16], strides = [1, 1]} : vector<16x32xf32> to vector<16x16xf32>
    %2 = vector.extract_strided_slice %0 {offsets = [0, 16], sizes = [16, 16], strides = [1, 1]} : vector<16x32xf32> to vector<16x16xf32>
    %c0_1 = arith.constant 0 : index
    %c0_2 = arith.constant 0 : index
    %3 = vector.load %arg2[%c0_1, %c0_2] : memref<16x64xf32, #tpu.memory_space<vmem>>, vector<16x64xf32>
    %cst = arith.constant dense<0.000000e+00> : vector<16x64xf32>
    %4 = tpu.matmul %1, %3, %cst {dimension_numbers = #tpu.dot_dimension_numbers<[1], [0], [0], [1], [0, 0, 1, 1], [], []>} : vector<16x16xf32>, vector<16x64xf32>, vector<16x64xf32> -> vector<16x64xf32>
    %c0_3 = arith.constant 0 : index
    %c0_4 = arith.constant 0 : index
    %5 = vector.load %arg3[%c0_3, %c0_4] : memref<1x64xf32, #tpu.memory_space<vmem>>, vector<1x64xf32>
    %6 = vector.broadcast %5 : vector<1x64xf32> to vector<16x64xf32>
    %7 = arith.addf %4, %6 : vector<16x64xf32>
    %cst_5 = arith.constant 0.000000e+00 : f32
    %8 = vector.broadcast %cst_5 : f32 to vector<16x64xf32>
    %9 = arith.maximumf %7, %8 : vector<16x64xf32>
    %c0_6 = arith.constant 0 : index
    %c0_7 = arith.constant 0 : index
    %c0_8 = arith.constant 0 : index
    %10 = vector.load %arg4[%c0_6, %c0_7, %c0_8] : memref<1x64x64xf32, #tpu.memory_space<vmem>>, vector<1x64x64xf32>
    %11 = vector.shape_cast %10 : vector<1x64x64xf32> to vector<64x64xf32>
    %cst_9 = arith.constant dense<0.000000e+00> : vector<16x64xf32>
    %12 = tpu.matmul %9, %11, %cst_9 {dimension_numbers = #tpu.dot_dimension_numbers<[1], [0], [0], [1], [0, 0, 1, 1], [], []>} : vector<16x64xf32>, vector<64x64xf32>, vector<16x64xf32> -> vector<16x64xf32>
    %c0_10 = arith.constant 0 : index
    %c0_11 = arith.constant 0 : index
    %c0_12 = arith.constant 0 : index
    %13 = vector.load %arg5[%c0_10, %c0_11, %c0_12] : memref<1x1x64xf32, #tpu.memory_space<vmem>>, vector<1x1x64xf32>
    %14 = vector.shape_cast %13 : vector<1x1x64xf32> to vector<1x64xf32>
    %15 = vector.broadcast %14 : vector<1x64xf32> to vector<16x64xf32>
    %16 = arith.addf %12, %15 : vector<16x64xf32>
    %cst_13 = arith.constant 0.000000e+00 : f32
    %17 = vector.broadcast %cst_13 : f32 to vector<16x64xf32>
    %18 = arith.maximumf %16, %17 : vector<16x64xf32>
    %c0_14 = arith.constant 0 : index
    %c0_15 = arith.constant 0 : index
    %19 = vector.load %arg6[%c0_14, %c0_15] : memref<64x64xf32, #tpu.memory_space<vmem>>, vector<64x64xf32>
    %cst_16 = arith.constant dense<0.000000e+00> : vector<16x64xf32>
    %20 = tpu.matmul %18, %19, %cst_16 {dimension_numbers = #tpu.dot_dimension_numbers<[1], [0], [0], [1], [0, 0, 1, 1], [], []>} : vector<16x64xf32>, vector<64x64xf32>, vector<16x64xf32> -> vector<16x64xf32>
    %c0_17 = arith.constant 0 : index
    %c0_18 = arith.constant 0 : index
    %21 = vector.load %arg7[%c0_17, %c0_18] : memref<1x64xf32, #tpu.memory_space<vmem>>, vector<1x64xf32>
    %22 = vector.broadcast %21 : vector<1x64xf32> to vector<16x64xf32>
    %23 = arith.addf %20, %22 : vector<16x64xf32>
    %24 = vector.extract_strided_slice %23 {offsets = [0, 0], sizes = [16, 32], strides = [1, 1]} : vector<16x64xf32> to vector<16x32xf32>
    %cst_19 = arith.constant 2.000000e+00 : f32
    %25 = vector.broadcast %cst_19 : f32 to vector<16x32xf32>
    %26 = arith.addf %24, %25 : vector<16x32xf32>
    %27 = vector.extract_strided_slice %23 {offsets = [0, 32], sizes = [16, 32], strides = [1, 1]} : vector<16x64xf32> to vector<16x32xf32>
    %28 = math.absf %26 : vector<16x32xf32>
    %cst_20 = arith.constant 0.000000e+00 : f32
    %29 = vector.broadcast %cst_20 : f32 to vector<16x32xf32>
    %30 = arith.subf %29, %28 : vector<16x32xf32>
    %31 = math.exp %30 : vector<16x32xf32>
    %cst_21 = arith.constant 0.000000e+00 : f32
    %32 = vector.broadcast %cst_21 : f32 to vector<16x32xf32>
    %33 = arith.minimumf %26, %32 : vector<16x32xf32>
    %34 = math.log1p %31 : vector<16x32xf32>
    %35 = arith.subf %33, %34 : vector<16x32xf32>
    %cst_22 = arith.constant 1.000000e+00 : f32
    %36 = vector.broadcast %cst_22 : f32 to vector<16x32xf32>
    %37 = arith.addf %36, %31 : vector<16x32xf32>
    %cst_23 = arith.constant 1.000000e+00 : f32
    %38 = vector.broadcast %cst_23 : f32 to vector<16x32xf32>
    %39 = arith.divf %38, %37 : vector<16x32xf32>
    %cst_24 = arith.constant 0.000000e+00 : f32
    %40 = vector.broadcast %cst_24 : f32 to vector<16x32xf32>
    %41 = arith.cmpf oge, %26, %40 : vector<16x32xf32>
    %42 = arith.mulf %31, %39 : vector<16x32xf32>
    %43 = arith.select %41, %39, %42 : vector<16x32xi1>, vector<16x32xf32>
    %cst_25 = arith.constant dense<0.000000e+00> : vector<16xf32>
    %44 = vector.multi_reduction <add>, %35, %cst_25 [1] : vector<16x32xf32> to vector<16xf32>
    %45 = vector.shape_cast %44 : vector<16xf32> to vector<16x1xf32>
    %c0_26 = arith.constant 0 : index
    %c0_27 = arith.constant 0 : index
    %46 = vector.load %arg9[%c0_26, %c0_27] : memref<16x1xf32, #tpu.memory_space<vmem>>, vector<16x1xf32>
    tpu.vector_store %arg9[%c0_26, %c0_27], %45 {strides = array<i32>} : memref<16x1xf32, #tpu.memory_space<vmem>>, vector<16x1xf32>,
    %47 = vector.extract_strided_slice %27 {offsets = [0, 0], sizes = [16, 16], strides = [1, 1]} : vector<16x32xf32> to vector<16x16xf32>
    %48 = arith.addf %2, %47 : vector<16x16xf32>
    %49 = vector.extract_strided_slice %43 {offsets = [0, 0], sizes = [16, 16], strides = [1, 1]} : vector<16x32xf32> to vector<16x16xf32>
    %50 = arith.mulf %48, %49 : vector<16x16xf32>
    %51 = vector.extract_strided_slice %27 {offsets = [0, 16], sizes = [16, 16], strides = [1, 1]} : vector<16x32xf32> to vector<16x16xf32>
    %52 = arith.addf %50, %51 : vector<16x16xf32>
    %53 = vector.extract_strided_slice %43 {offsets = [0, 16], sizes = [16, 16], strides = [1, 1]} : vector<16x32xf32> to vector<16x16xf32>
    %54 = arith.mulf %52, %53 : vector<16x16xf32>
    %55 = tpu.concatenate %1, %54 in 1 : vector<16x16xf32>, vector<16x16xf32> -> vector<16x32xf32>
    %c0_28 = arith.constant 0 : index
    %c0_29 = arith.constant 0 : index
    %56 = vector.load %arg8[%c0_28, %c0_29] : memref<16x32xf32, #tpu.memory_space<vmem>>, vector<16x32xf32>
    tpu.vector_store %arg8[%c0_28, %c0_29], %55 {strides = array<i32>} : memref<16x32xf32, #tpu.memory_space<vmem>>, vector<16x32xf32>,
    return
  }
  func.func @transform_0(%arg0: i32) -> (i32, i32) {
    %c0_i32 = arith.constant 0 : i32
    %c0_i32_0 = arith.constant 0 : i32
    return %arg0, %c0_i32 : i32, i32
  }
  func.func @transform_1(%arg0: i32) -> (i32, i32) {
    %c0_i32 = arith.constant 0 : i32
    %c0_i32_0 = arith.constant 0 : i32
    %c0_i32_1 = arith.constant 0 : i32
    return %c0_i32, %c0_i32_0 : i32, i32
  }
  func.func @transform_2(%arg0: i32) -> (i32, i32) {
    %c0_i32 = arith.constant 0 : i32
    %c0_i32_0 = arith.constant 0 : i32
    %c0_i32_1 = arith.constant 0 : i32
    return %c0_i32, %c0_i32_0 : i32, i32
  }
  func.func @transform_3(%arg0: i32) -> (i32, i32, i32) {
    %c0_i32 = arith.constant 0 : i32
    %c0_i32_0 = arith.constant 0 : i32
    %c0_i32_1 = arith.constant 0 : i32
    %c0_i32_2 = arith.constant 0 : i32
    return %c0_i32, %c0_i32_0, %c0_i32_1 : i32, i32, i32
  }
  func.func @transform_4(%arg0: i32) -> (i32, i32, i32) {
    %c0_i32 = arith.constant 0 : i32
    %c0_i32_0 = arith.constant 0 : i32
    %c0_i32_1 = arith.constant 0 : i32
    %c0_i32_2 = arith.constant 0 : i32
    return %c0_i32, %c0_i32_0, %c0_i32_1 : i32, i32, i32
  }
  func.func @transform_5(%arg0: i32) -> (i32, i32) {
    %c0_i32 = arith.constant 0 : i32
    %c0_i32_0 = arith.constant 0 : i32
    %c0_i32_1 = arith.constant 0 : i32
    return %c0_i32, %c0_i32_0 : i32, i32
  }
  func.func @transform_6(%arg0: i32) -> (i32, i32) {
    %c0_i32 = arith.constant 0 : i32
    %c0_i32_0 = arith.constant 0 : i32
    %c0_i32_1 = arith.constant 0 : i32
    return %c0_i32, %c0_i32_0 : i32, i32
  }
  func.func @transform_7(%arg0: i32) -> (i32, i32) {
    %c0_i32 = arith.constant 0 : i32
    %c0_i32_0 = arith.constant 0 : i32
    return %arg0, %c0_i32 : i32, i32
  }
  func.func @transform_8(%arg0: i32) -> (i32, i32) {
    %c0_i32 = arith.constant 0 : i32
    %c0_i32_0 = arith.constant 0 : i32
    return %arg0, %c0_i32 : i32, i32
  }
}

</mosaic_0001>

<bundles_post_ra>
// kernel: squeeze.1
= control target key start
LH: loop header
LB: loop body
LE: loop exit
PB: predicated region body
PF: predicated region fallthrough
CT: control target
= control target key end

     0   :  { %vm7_vm0 = vcmask 64512   ;;  %s39_s0 = inlined_call_operand.vmem [shape: f32[16], index: 0, kind: input, shape index: {}]   ;;  %s40_s1 = inlined_call_operand.vmem [shape: f32[2,8], index: 1, kind: output, shape index: {}]  }
   0x1   :  { %v4_v0 = vld [vmem:[%s39_s0] sm:$0x1]  ;;  %s22_s0 = smov 120  }
   0x2   :  { %5 = vst [vmem:[#allocation1] sm:$0x1] %v4_v0 }
   0x9   :  { %v9_v1 = vld [vmem:[#allocation1] sm:$0x1]  }
   0xa   :  { %v6_v2 = vld [vmem:[#allocation1] sm:$0x1]   ;;  %10 = vrot.lane.b32.xlu0 %v9_v1, %s22_s0 }
   0xb   :  { %8 = vst.msk [vmem:[#allocation0] sm:$0x1] %vm7_vm0, %v6_v2  }
  0x7c   :  { %v11_v3 = vpop.permute.xlu0 %10  }
  0x7d   :  { %14 = vst.msk [vmem:[#allocation0 + $0x1] sm:$0x1] %vm7_vm0, %v11_v3  }
  0x84   :  { %v17_v4 = vld [vmem:[#allocation0] sm:$0x3] }
  0x85   :  { %20 = vst [vmem:[%s40_s1] sm:$0x3] %v17_v4 }

// kernel: efficient_vrnvp_forward.1
= control target key start
LH: loop header
LB: loop body
LE: loop exit
PB: predicated region body
PF: predicated region fallthrough
CT: control target
= control target key end

     0   :  { %vm37_vm0 = vcmask 130048   ;;  %s529_s0 = inlined_call_operand.vmem [shape: f32[16,32], index: 0, kind: input, shape index: {}]   ;;  %s530_s1 = inlined_call_operand.vmem [shape: f32[16,64], index: 1, kind: input, shape index: {}]   ;;  %s531_s2 = inlined_call_operand.vmem [shape: f32[1,64], index: 2, kind: input, shape index: {}]   ;;  %s532_s3 = inlined_call_operand.vmem [shape: f32[1,64,64], index: 3, kind: input, shape index: {}]   ;;  %s533_s4 = inlined_call_operand.vmem [shape: f32[1,1,64], index: 4, kind: input, shape index: {}]   ;;  %s534_s5 = inlined_call_operand.vmem [shape: f32[64,64], index: 5, kind: input, shape index: {}]   ;;  %s535_s6 = inlined_call_operand.vmem [shape: f32[1,64], index: 6, kind: input, shape index: {}]   ;;  %s536_s7 = inlined_call_operand.hbm [shape: f32[16,32], index: 7, kind: output, shape index: {0}]   ;;  %s537_s8 = inlined_call_operand.vmem [shape: f32[16,1], index: 8, kind: output, shape index: {1}]  }
   0x1   :  { %v32_v0 = vld [vmem:[%s530_s1 + $0x8] sm:$0xff]  ;;  %v31_v1 = vld [vmem:[%s530_s1] sm:$0xff]  ;;  %v76_v3 = vld [vmem:[%s532_s3 + $0x38] sm:$0xff] }
   0x2   :  { %58 = vmatpush.msra.mxu0 %v32_v0  ;;  %v419_v2 = vld [vmem:[%s529_s0] sm:$0xff]  ;;  %v75_v4 = vld [vmem:[%s532_s3 + $0x30] sm:$0xff]  ;;  %96 = vmatpush.msra.mxu1 %v76_v3  ;;  %v74_v5 = vld [vmem:[%s532_s3 + $0x28] sm:$0xff] }
   0x3   :  { %296 = vmatpush.msra.mxu3 %v76_v3 }
   0x4   :  { %59 = vmatpush.msra.mxu0 %v31_v1  ;;  %97 = vmatpush.msra.mxu1 %v75_v4 }
   0x5   :  { %290 = vmatmul.msk.f32.vlgmr.msra.gmra.mxu0 %vm37_vm0, %v419_v2 }
   0x6   :  { %14 = vsyncpa [#allocation3], 0  ;;  %v73_v6 = vld [vmem:[%s532_s3 + $0x20] sm:$0xff]  ;;  %297 = vmatpush.msra.mxu3 %v75_v4  ;;  %98 = vmatpush.msra.mxu1 %v74_v5  ;;  %v72_v7 = vld [vmem:[%s532_s3 + $0x18] sm:$0xff]  ;;  %vm81_vm1 = vcmask 523264   ;;  %vm224_vm14 = vcmask 261120  }
   0x7   :  { %v441_v8 = vld [vmem:[%s529_s0 + $0x8] sm:$0xff]  ;;  %v71_v9 = vld [vmem:[%s532_s3 + $0x10] sm:$0xff]  ;;  %v69_v11 = vld [vmem:[%s532_s3] sm:$0xff]  ;;  %s362_s24 = smov [#allocation2]   ;;  %s274_s27 = sshll.u32 %s536_s7, 4  ;;  %vm231_vm15 = vcmask 7168   ;;  %s275_s27 = int_to_ptr.hbm [resolvable:$true] %s274_s27 }
   0x8   :  { %298 = vmatpush.msra.mxu3 %v74_v5  ;;  %99 = vmatpush.msra.mxu1 %v73_v6  ;;  %v70_v10 = vld [vmem:[%s532_s3 + $0x8] sm:$0xff]  ;;  %v120_v12 = vld [vmem:[%s534_s5 + $0x38] sm:$0xff]  ;;  %v119_v13 = vld [vmem:[%s534_s5 + $0x30] sm:$0xff]  ;;  %s272_s25 = sshll.u32 %s362_s24, 4  ;;  %s363_s30 = smov 128   ;;  %s273_s25 = int_to_ptr.vmem [resolvable:$true] %s272_s25 }
   0x9   :  { %139 = vmatpush.msrb.mxu0 %v120_v12  ;;  %304 = vmatpush.msra.mxu2 %v120_v12  ;;  %v118_v14 = vld [vmem:[%s534_s5 + $0x28] sm:$0xff]  ;;  %v117_v15 = vld [vmem:[%s534_s5 + $0x20] sm:$0xff]  ;;  %v116_v16 = vld [vmem:[%s534_s5 + $0x18] sm:$0xff]  ;;  %s364_s9 = smov 8  }
   0xa   :  { %299 = vmatpush.msra.mxu3 %v73_v6  ;;  %100 = vmatpush.msra.mxu1 %v72_v7  ;;  %v318_v17 = vld [vmem:[%s531_s2] ss:$0 sm:$0xff]  ;;  %v115_v24 = vld [vmem:[%s534_s5 + $0x10] sm:$0xff]  ;;  %v114_v25 = vld [vmem:[%s534_s5 + $0x8] sm:$0xff] }
   0xb   :  { %140 = vmatpush.msrb.mxu0 %v119_v13  ;;  %305 = vmatpush.msra.mxu2 %v119_v13  ;;  %v113_v26 = vld [vmem:[%s534_s5] sm:$0xff]  ;;  %s359_s5 = smov 96  }
   0xc   :  { %300 = vmatpush.msra.mxu3 %v72_v7  ;;  %101 = vmatpush.msra.mxu1 %v71_v9  ;;  %v319_v27 = vld [vmem:[%s533_s4] ss:$0 sm:$0xff]  ;;  %s360_s4 = smov 112  }
   0xd   :  { %291 = vmatmul.msk.f32.gmra.mxu0 %vm37_vm0, %v441_v8  ;;  %306 = vmatpush.msra.mxu2 %v118_v14  ;;  %v320_v34 = vld [vmem:[%s535_s6] ss:$0 sm:$0xff]  ;;  %s361_s6 = smov 16  }
   0xe   :  { %301 = vmatpush.msra.mxu3 %v71_v9  ;;  %102 = vmatpush.msra.mxu1 %v70_v10 }
   0xf   :  { %141 = vmatpush.msrb.mxu0 %v118_v14  ;;  %307 = vmatpush.msra.mxu2 %v117_v15 }
  0x10   :  { %302 = vmatpush.msra.mxu3 %v70_v10  ;;  %103 = vmatpush.msra.mxu1 %v69_v11 }
  0x11   :  { %142 = vmatpush.msrb.mxu0 %v117_v15  ;;  %308 = vmatpush.msra.mxu2 %v116_v16 }
  0x12   :  { %303 = vmatpush.msra.mxu3 %v69_v11 }
  0x13   :  { %143 = vmatpush.msrb.mxu0 %v116_v16  ;;  %309 = vmatpush.msra.mxu2 %v115_v24 }
  0x15   :  { %144 = vmatpush.msrb.mxu0 %v115_v24  ;;  %310 = vmatpush.msra.mxu2 %v114_v25 }
  0x17   :  { %145 = vmatpush.msrb.mxu0 %v114_v25  ;;  %311 = vmatpush.msra.mxu2 %v113_v26 }
  0x19   :  { %146 = vmatpush.msrb.mxu0 %v113_v26 }
  0x82   :  { %v61_v18 = vpop.f32.mrf.mxu0 }
  0x83   :  { %v62_v19 = vadd.f32 %v318_v17, %v61_v18 }
  0x85   :  { %v67_v20 = vmax.f32 %v62_v19, 0.0 }
  0x87   :  { %292 = vmatmul.msk.f32.vlgmr.msra.gmra.mxu1 %vm81_vm1, %v67_v20 }
  0x8a   :  { %v64_v21 = vpop.f32.mrf.mxu0 }
  0x8b   :  { %v65_v22 = vadd.f32 %v318_v17, %v64_v21 }
  0x8d   :  { %v68_v23 = vmax.f32 %v65_v22, 0.0 }
  0x8f   :  { %293 = vmatmul.msk.f32.vlgmr.msra.gmra.mxu3 %vm81_vm1, %v68_v23 }
 0x104   :  { %v105_v28 = vpop.f32.mrf.mxu1 }
 0x105   :  { %v106_v29 = vadd.f32 %v319_v27, %v105_v28 }
 0x107   :  { %v111_v30 = vmax.f32 %v106_v29, 0.0 }
 0x109   :  { %294 = vmatmul.msk.f32.vlgmr.msrb.gmra.mxu0 %vm81_vm1, %v111_v30 }
 0x112   :  { %v108_v31 = vpop.f32.mrf.mxu3 }
 0x113   :  { %v109_v32 = vadd.f32 %v319_v27, %v108_v31 }
 0x115   :  { %v112_v33 = vmax.f32 %v109_v32, 0.0 }
 0x117   :  { %295 = vmatmul.msk.f32.vlgmr.msra.gmra.mxu2 %vm81_vm1, %v112_v33 }
 0x186   :  { %v148_v35 = vpop.f32.mrf.mxu0 }
 0x187   :  { %v149_v36 = vadd.f32 %v320_v34, %v148_v35 }
 0x189   :  { %v491_v37 = vadd.f32 2.0, %v149_v36  ;;  %254 = vrot.lane.b32.xlu2 %v149_v36, %s359_s5  ;;  %236 = vrot.lane.b32.xlu0 %v149_v36, %s360_s4 }
 0x18b   :  { %v156_v38 = vand.u32 2147483647, %v491_v37  ;;  %vm218_vm6 = vcmp.ge.f32.partialorder %v491_v37, 0.0  ;;  %v164_v28 = vmin.f32 %v491_v37, 0.0 }
 0x18d   :  { %v158_v39 = vsub.f32 0.0, %v156_v38 }
 0x18f   :  { %v160_v40 = vmul.f32 1.442695, %v158_v39 }
 0x191   :  { %321 = vpow2.f32 %v160_v40 }
 0x197   :  { %v494_v41 = vpop.eup %321 }
 0x198   :  { %v166_v42 = vadd.f32 1.0, %v494_v41  ;;  %v169_v4 = vmul.f32 -0.5, %v494_v41  ;;  %v172_v19 = vand.u32 2147483647, %v494_v41 }
 0x19a   :  { %v151_v43 = vpop.f32.mrf.mxu2  ;;  %323 = vrcp.f32 %v166_v42  ;;  %v199_v52 = vand.u32 2147483648, %v166_v42  ;;  %v197_v54 = vand.u32 2147483647, %v166_v42  ;;  %vm193_vm3 = vweird.f32 %v166_v42 }
 0x19b   :  { %v152_v44 = vadd.f32 %v320_v34, %v151_v43  ;;  %v170_v14 = vadd.f32 1.0, %v169_v4  ;;  %vm173_vm12 = vcmp.lt.f32.partialorder %v172_v19, 0.0004427343 }
 0x19c   :  { %v200_v56 = vor.u32 1.1754944e-38, %v199_v52  ;;  %vm198_vm5 = vcmp.eq.f32.partialorder %v197_v54, 8.507059e+37 }
 0x19d   :  { %v497_v45 = vadd.f32 2.0, %v152_v44  ;;  %256 = vrot.lane.b32.xlu2 %v152_v44, %s359_s5  ;;  %238 = vrot.lane.b32.xlu0 %v152_v44, %s360_s4  ;;  %v171_v24 = vmul.f32 %v494_v41, %v170_v14 }
 0x19f   :  { %v157_v46 = vand.u32 2147483647, %v497_v45  ;;  %v165_v11 = vmin.f32 %v497_v45, 0.0  ;;  %vm219_vm13 = vcmp.ge.f32.partialorder %v497_v45, 0.0 }
 0x1a0   :  { %v324_v47 = vpop.eup %323 }
 0x1a1   :  { %v159_v48 = vsub.f32 0.0, %v157_v46  ;;  %v189_v49 = vmul.f32 %v324_v47, %v166_v42  ;;  %vm194_vm2 = vweird.f32 %v324_v47 }
 0x1a2   :  { %vm195_vm4 = vmor %vm193_vm3, %vm194_vm2 }
 0x1a3   :  { %v162_v50 = vmul.f32 1.442695, %v159_v48  ;;  %v190_v51 = vsub.f32 1.0, %v189_v49 }
 0x1a5   :  { %325 = vpow2.f32 %v162_v50  ;;  %v191_v53 = vmul.f32 %v324_v47, %v190_v51 }
 0x1a7   :  { %v192_v55 = vadd.f32 %v324_v47, %v191_v53 }
 0x1a9   :  { %v196_v57 = vsel %vm195_vm4, %v324_v47, %v192_v55 }
 0x1aa   :  { %v201_v58 = vsel %vm198_vm5, %v200_v56, %v196_v57 }
 0x1ab   :  { %v326_v59 = vpop.eup %325  ;;  %v220_v60 = vmul.f32 %v494_v41, %v201_v58 }
 0x1ac   :  { %v175_v61 = vadd.f32 1.0, %v326_v59  ;;  %v178_v63 = vmul.f32 -0.5, %v326_v59  ;;  %v181_v1 = vand.u32 2147483647, %v326_v59 }
 0x1ad   :  { %v222_v62 = vsel %vm218_vm6, %v201_v58, %v220_v60 }
 0x1ae   :  { %246 = vrot.lane.b32.xlu1 %v222_v62, %s361_s6  ;;  %327 = vrcp.f32 %v175_v61  ;;  %v179_v0 = vadd.f32 1.0, %v178_v63  ;;  %vm182_vm7 = vcmp.lt.f32.partialorder %v181_v1, 0.0004427343  ;;  %v214_v13 = vand.u32 2147483648, %v175_v61 }
 0x1af   :  { %329 = vlog2.f32 %v175_v61  ;;  %v212_v17 = vand.u32 2147483647, %v175_v61  ;;  %vm208_vm9 = vweird.f32 %v175_v61 }
 0x1b0   :  { %331 = vlog2.f32 %v166_v42  ;;  %v180_v9 = vmul.f32 %v326_v59, %v179_v0  ;;  %v215_v22 = vor.u32 1.1754944e-38, %v214_v13 }
 0x1b1   :  { %vm213_vm11 = vcmp.eq.f32.partialorder %v212_v17, 8.507059e+37 }
 0x1b4   :  { %v328_v3 = vpop.eup %327 }
 0x1b5   :  { %v330_v5 = vpop.eup %329  ;;  %v204_v6 = vmul.f32 %v328_v3, %v175_v61  ;;  %vm209_vm8 = vweird.f32 %v328_v3 }
 0x1b6   :  { %v177_v7 = vmul.f32 0.6931472, %v330_v5  ;;  %v332_v12 = vpop.eup %331  ;;  %vm210_vm10 = vmor %vm208_vm9, %vm209_vm8 }
 0x1b7   :  { %v205_v10 = vsub.f32 1.0, %v204_v6  ;;  %v168_v21 = vmul.f32 0.6931472, %v332_v12 }
 0x1b8   :  { %v183_v15 = vsel %vm182_vm7, %v180_v9, %v177_v7 }
 0x1b9   :  { %v206_v16 = vmul.f32 %v328_v3, %v205_v10  ;;  %v185_v18 = vsub.f32 %v165_v11, %v183_v15  ;;  %v174_v27 = vsel %vm173_vm12, %v171_v24, %v168_v21 }
 0x1ba   :  { %v184_v30 = vsub.f32 %v164_v28, %v174_v27 }
 0x1bb   :  { %v207_v20 = vadd.f32 %v328_v3, %v206_v16  ;;  %v228_v32 = vsel %vm224_vm14, %v185_v18, 0.0 }
 0x1bc   :  { %v225_v31 = vsel %vm224_vm14, %v184_v30, 0.0 }
 0x1bd   :  { %v211_v23 = vsel %vm210_vm10, %v328_v3, %v207_v20 }
 0x1be   :  { %v216_v25 = vsel %vm213_vm11, %v215_v22, %v211_v23 }
 0x1bf   :  { %v221_v26 = vmul.f32 %v326_v59, %v216_v25 }
 0x1c1   :  { %v223_v29 = vsel %vm219_vm13, %v216_v25, %v221_v26 }
 0x1c2   :  { %248 = vrot.lane.b32.xlu1 %v223_v29, %s361_s6 }
 0x1c7   :  { %226 = vadd.xlane.f32.xlu0 %v225_v31 }
 0x1e3   :  { %v255_v38 = vpop.permute.xlu2 %254 }
 0x1ec   :  { %229 = vadd.xlane.f32.xlu1 %v228_v32 }
 0x1f7   :  { %v257_v45 = vpop.permute.xlu2 %256 }
 0x1fb   :  { %v237_v33 = vpop.permute.xlu0 %236 }
 0x1fc   :  { %v242_v34 = vadd.f32 %v237_v33, %v419_v2 }
 0x20f   :  { %v239_v41 = vpop.permute.xlu0 %238 }
 0x210   :  { %v243_v42 = vadd.f32 %v239_v41, %v441_v8 }
 0x220   :  { %v247_v35 = vpop.permute.xlu1 %246 }
 0x221   :  { %v252_v36 = vmul.f32 %v247_v35, %v242_v34 }
 0x223   :  { %v260_v39 = vadd.f32 %v255_v38, %v252_v36 }
 0x225   :  { %v262_v40 = vmul.f32 %v260_v39, %v222_v62 }
 0x227   :  { %v264_v37 = vsel %vm37_vm0, %v419_v2, %v262_v40 }
 0x228   :  { %266 = vst.msk [vmem:[#allocation2] sm:$0xff] %vm224_vm14, %v264_v37 }
 0x234   :  { %v249_v43 = vpop.permute.xlu1 %248 }
 0x235   :  { %v253_v44 = vmul.f32 %v249_v43, %v243_v42 }
 0x237   :  { %v261_v46 = vadd.f32 %v257_v45, %v253_v44 }
 0x239   :  { %v263_v47 = vmul.f32 %v261_v46, %v223_v29 }
 0x23a   :  { %v227_v2 = vpop.xlane.xlu0 %226 }
 0x23b   :  { %v265_v48 = vsel %vm37_vm0, %v441_v8, %v263_v47  ;;  %232 = vst.msk [vmem:[%s537_s8] sm:$0xff] %vm231_vm15, %v227_v2 }
 0x23c   :  { %267 = vst.msk [vmem:[#allocation2 + $0x8] sm:$0xff] %vm224_vm14, %v265_v48 }
 0x23d   :  { %280 = dma.vmem_to_hbm [thread:$0]  %s273_s25, 256, %s275_s27, [#allocation3], %s363_s30, %s363_s30, %s364_s9  }
 0x25f   :  { %v230_v49 = vpop.xlane.xlu1 %229 }
 0x260   :  { %233 = vst.msk [vmem:[%s537_s8 + $0x8] sm:$0xff] %vm231_vm15, %v230_v49 }
 0x261   :  { %357 = dma.done.wait [#allocation3], 256  }
 0x262   :  { %358 = vsyncadd [#allocation3], 4294967040 }
 0x263   :  { %289 = vsyncpa [#allocation3], 1 }

</bundles_post_ra>
